<compile_context>
chip_gen: v7x
topology: tpu7x:2x2x1
jax: 0.10.0
libtpu: 0.0.40
codegen_flags: <defaults>
</compile_context>

<pallas_src>
import jax
import jax.numpy as jnp
from jax.experimental import pallas as pl
from jax.experimental.pallas import tpu as pltpu

_LANES = 128
_SUBLANES = 8


def _vortex_kernel(coef_a_ref, coef_c_ref, bias_ref, x_ref, o_ref):
    # coef_a_ref / coef_c_ref / bias_ref: VMEM f32[1, 128] lane-constant rows
    # x_ref / o_ref: VMEM f32[tile, 128]; even lanes hold x[:, 0], odd lanes x[:, 1]
    x = x_ref[...]                                     # one dense load per tile

    # jnp.roll semantics: roll(x, s)[i] = x[(i - s) mod 128]
    #   shift = 127 (== -1): lane j reads x[j + 1]  -> used on even lanes
    #   shift = 1:           lane j reads x[j - 1]  -> used on odd lanes
    nbr_hi = pltpu.roll(x, shift=_LANES - 1, axis=1)   # x[:, 1] onto even lanes
    nbr_lo = pltpu.roll(x, shift=1, axis=1)            # x[:, 0] onto odd lanes

    o_ref[...] = (coef_a_ref[...] * nbr_hi
                  + coef_c_ref[...] * nbr_lo
                  + bias_ref[...])                     # single unmasked dense store


def big_vortex_forward(x, x0, y0, logyscale, scale, *, max_tile_rows=8192):
    """x: f32[N, 2] -> f32[N, 2]  (same math as big_vortex.forward)."""
    n = x.shape[0]
    total = 2 * n

    # ---- scalar precompute in the wrapper ------------------------------------
    as_s = lambda v: jnp.asarray(v, jnp.float32).reshape(())
    scale_f = as_s(scale)
    a = scale_f * jnp.exp(-as_s(logyscale))        # out[:, 0] = a * x[:, 1] + b
    b = -a * as_s(y0)
    c = -scale_f                                   # out[:, 1] = c * x[:, 0] + d
    d = scale_f * as_s(x0)

    # Lane-parity coefficient / bias rows (hoisted out of the kernel body).
    is_even = (jnp.arange(_LANES) % 2) == 0
    zero = jnp.float32(0.0)
    coef_a = jnp.where(is_even, a, zero).astype(jnp.float32).reshape(1, _LANES)
    coef_c = jnp.where(is_even, zero, c).astype(jnp.float32).reshape(1, _LANES)
    bias = jnp.where(is_even, b, d).astype(jnp.float32).reshape(1, _LANES)

    # ---- lane-dense view: row-major (N, 2) -> (M, 128) ------------------------
    flat = x.astype(jnp.float32).reshape(-1)       # (2N,), channel-interleaved
    padded = pl.cdiv(total, _LANES) * _LANES       # minimal pad: <= 127 elements
    if padded != total:
        flat = jnp.pad(flat, (0, padded - total))
    m = padded // _LANES
    x2d = flat.reshape(m, _LANES)

    # Tile: as many rows as fit (4 MiB/buffer at 8192 rows); multiple of 8
    # sublanes unless a single block covers the whole array.
    tile = min(max_tile_rows, m)
    if tile != m:
        tile = max(_SUBLANES, (tile // _SUBLANES) * _SUBLANES)
    grid = (pl.cdiv(m, tile),)                     # partial last block handled by Pallas

    out2d = pl.pallas_call(
        _vortex_kernel,
        out_shape=jax.ShapeDtypeStruct((m, _LANES), jnp.float32),
        grid=grid,
        in_specs=[
            pl.BlockSpec((1, _LANES), lambda i: (0, 0)),     # coefA (resident)
            pl.BlockSpec((1, _LANES), lambda i: (0, 0)),     # coefC (resident)
            pl.BlockSpec((1, _LANES), lambda i: (0, 0)),     # bias  (resident)
            pl.BlockSpec((tile, _LANES), lambda i: (i, 0)),  # lane-dense input tile
        ],
        out_specs=pl.BlockSpec((tile, _LANES), lambda i: (i, 0)),
        compiler_params=pltpu.CompilerParams(
            dimension_semantics=("parallel",),     # shard row grid across TCs
            vmem_limit_bytes=32 * 1024 * 1024,     # 16 MiB pipeline footprint fits
        ),
        cost_estimate=pl.CostEstimate(
            flops=4 * m * _LANES,                  # 2 mul + 2 add per element
            transcendentals=0,
            bytes_accessed=2 * m * _LANES * 4,     # read + write, f32
        ),
    )(coef_a, coef_c, bias, x2d)

    out_flat = out2d.reshape(-1)
    if padded != total:
        out_flat = out_flat[:total]
    return out_flat.reshape(n, 2)


if __name__ == "__main__":
    key = jax.random.PRNGKey(0)

    # Small example input: batch of 8 points in 2D phase space, (N, 2).
    n = 8
    x = jax.random.normal(key, (n, 2), dtype=jnp.float32)

    # Deterministic parameters (four scalars, as in big_vortex.__init__).
    x0 = jnp.float32(0.1)
    y0 = jnp.float32(-0.2)
    logyscale = jnp.float32(0.3)
    scale = jnp.float32(1.5)

    out = big_vortex_forward(x, x0, y0, logyscale, scale)
    out = jax.block_until_ready(out)

    # Pure-JAX reference (same math as the PyTorch forward).
    xx_ref = x[:, 0] - x0
    y_ref = (x[:, 1] - y0) * jnp.exp(-logyscale)
    ref = scale * jnp.stack([y_ref, -xx_ref], axis=1)

    assert out.shape == (n, 2)
    assert jnp.allclose(out, ref, atol=1e-5, rtol=1e-5), (out, ref)

    print("KERNEL_OK")
</pallas_src>

<mosaic_0001>
module attributes {stable_mosaic.version = 11 : i64} {
  func.func @_vortex_kernel(%arg0: i32, %arg1: memref<1x128xf32, #tpu.memory_space<vmem>>, %arg2: memref<1x128xf32, #tpu.memory_space<vmem>>, %arg3: memref<1x128xf32, #tpu.memory_space<vmem>>, %arg4: memref<1x128xf32, #tpu.memory_space<vmem>>, %arg5: memref<1x128xf32, #tpu.memory_space<vmem>>) attributes {dimension_semantics = [#tpu.dimension_semantics<parallel>], iteration_bounds = array<i64: 1>, scalar_prefetch = 0 : i64, scratch_operands = 0 : i64, tpu.core_type = #tpu.core_type<tc>, window_params = [{pipeline_mode = #tpu.pipeline_mode<synchronous>, transform_indices = @transform_0, window_bounds = array<i64: 1, 128>}, {pipeline_mode = #tpu.pipeline_mode<synchronous>, transform_indices = @transform_1, window_bounds = array<i64: 1, 128>}, {pipeline_mode = #tpu.pipeline_mode<synchronous>, transform_indices = @transform_2, window_bounds = array<i64: 1, 128>}, {transform_indices = @transform_3, window_bounds = array<i64: 1, 128>}, {transform_indices = @transform_4, window_bounds = array<i64: 1, 128>}]} {
    %c0 = arith.constant 0 : index
    %c0_0 = arith.constant 0 : index
    %0 = vector.load %arg4[%c0, %c0_0] : memref<1x128xf32, #tpu.memory_space<vmem>>, vector<1x128xf32>
    %c127_i32 = arith.constant 127 : i32
    %1 = tpu.dynamic_rotate %0 by %c127_i32 dim 1 : vector<1x128xf32>, i32 -> vector<1x128xf32>
    %c1_i32 = arith.constant 1 : i32
    %2 = tpu.dynamic_rotate %0 by %c1_i32 dim 1 : vector<1x128xf32>, i32 -> vector<1x128xf32>
    %c0_1 = arith.constant 0 : index
    %c0_2 = arith.constant 0 : index
    %3 = vector.load %arg1[%c0_1, %c0_2] : memref<1x128xf32, #tpu.memory_space<vmem>>, vector<1x128xf32>
    %4 = arith.mulf %3, %1 : vector<1x128xf32>
    %c0_3 = arith.constant 0 : index
    %c0_4 = arith.constant 0 : index
    %5 = vector.load %arg2[%c0_3, %c0_4] : memref<1x128xf32, #tpu.memory_space<vmem>>, vector<1x128xf32>
    %6 = arith.mulf %5, %2 : vector<1x128xf32>
    %7 = arith.addf %4, %6 : vector<1x128xf32>
    %c0_5 = arith.constant 0 : index
    %c0_6 = arith.constant 0 : index
    %8 = vector.load %arg3[%c0_5, %c0_6] : memref<1x128xf32, #tpu.memory_space<vmem>>, vector<1x128xf32>
    %9 = arith.addf %7, %8 : vector<1x128xf32>
    %c0_7 = arith.constant 0 : index
    %c0_8 = arith.constant 0 : index
    %10 = vector.load %arg5[%c0_7, %c0_8] : memref<1x128xf32, #tpu.memory_space<vmem>>, vector<1x128xf32>
    tpu.vector_store %arg5[%c0_7, %c0_8], %9 {strides = array<i32>} : memref<1x128xf32, #tpu.memory_space<vmem>>, vector<1x128xf32>,
    return
  }
  func.func @transform_0(%arg0: i32) -> (i32, i32) {
    %c0_i32 = arith.constant 0 : i32
    %c0_i32_0 = arith.constant 0 : i32
    %c0_i32_1 = arith.constant 0 : i32
    return %c0_i32, %c0_i32_0 : i32, i32
  }
  func.func @transform_1(%arg0: i32) -> (i32, i32) {
    %c0_i32 = arith.constant 0 : i32
    %c0_i32_0 = arith.constant 0 : i32
    %c0_i32_1 = arith.constant 0 : i32
    return %c0_i32, %c0_i32_0 : i32, i32
  }
  func.func @transform_2(%arg0: i32) -> (i32, i32) {
    %c0_i32 = arith.constant 0 : i32
    %c0_i32_0 = arith.constant 0 : i32
    %c0_i32_1 = arith.constant 0 : i32
    return %c0_i32, %c0_i32_0 : i32, i32
  }
  func.func @transform_3(%arg0: i32) -> (i32, i32) {
    %c0_i32 = arith.constant 0 : i32
    %c0_i32_0 = arith.constant 0 : i32
    return %arg0, %c0_i32 : i32, i32
  }
  func.func @transform_4(%arg0: i32) -> (i32, i32) {
    %c0_i32 = arith.constant 0 : i32
    %c0_i32_0 = arith.constant 0 : i32
    return %arg0, %c0_i32 : i32, i32
  }
}

</mosaic_0001>

<bundles_post_ra>
// kernel: tpu_custom_call.1
= control target key start
LH: loop header
LB: loop body
LE: loop exit
PB: predicated region body
PF: predicated region fallthrough
CT: control target
= control target key end

     0   :  { %9 = vsyncpa [#allocation3], 0  ;;  %s172_s0 = inlined_call_operand.hbm [shape: f32[1,128], index: 0, kind: input, shape index: {}]   ;;  %s173_s1 = inlined_call_operand.vmem [shape: f32[1,128], index: 1, kind: input, shape index: {}]   ;;  %s174_s2 = inlined_call_operand.vmem [shape: f32[1,128], index: 2, kind: input, shape index: {}]   ;;  %s175_s3 = inlined_call_operand.vmem [shape: f32[1,128], index: 3, kind: input, shape index: {}]   ;;  %s176_s4 = inlined_call_operand.hbm [shape: f32[1,128], index: 4, kind: output, shape index: {}]  }
   0x1   :  { %10 = vsyncpa [#allocation4], 0  ;;  %s110_s15 = smov [#allocation2]   ;;  %s62_s19 = scalar_lea.hbm %s172_s0, 16 }
   0x2   :  { %s17_s16 = sshll.u32 %s110_s15, 4  ;;  %p63_p0 = scmp.ne.s32.totalorder %s172_s0, %s62_s19  ;;  %s18_s16 = int_to_ptr.vmem [resolvable:$true] %s17_s16 }
   0x3   :  { %p66_p1 = scmp.lt.u32.totalorder %s62_s19, %s172_s0 }
   0x5   :  { %p68_p2 = pnand %p66_p1, %p63_p0 }
   0x7   :  { %71 = shalt.err (!%p68_p2)
}
   0x8   :  { %s72_s24 = scalar_lea.vmem %s18_s16, 16  ;;  %s76_s25 = scalar_lea.vmem %s18_s16, 32 }
   0x9   :  { %p73_p3 = scmp.ne.s32.totalorder %s18_s16, %s72_s24  ;;  %p77_p4 = scmp.lt.s32.totalorder %s18_s16, %s18_s16 }
   0xa   :  { %p78_p5 = scmp.lt.s32.totalorder %s76_s25, %s72_s24 }
   0xc   :  { %p79_p6 = por %p78_p5, %p77_p4 }
   0xe   :  { %p80_p7 = pnand %p79_p6, %p73_p3 }
  0x10   :  { %83 = shalt.err (!%p80_p7)
}
  0x11   :  { %20 = dma.hbm_to_vmem [thread:$0]  %s172_s0, 16, %s18_s16, [#allocation3]  }
  0x12   :  { %106 = dma.done.wait [#allocation3], 16  }
  0x13   :  { %107 = vsyncadd [#allocation3], 4294967280  ;;  %v30_v0 = vld [vmem:[%s175_s3] sm:$0x1]  ;;  %s111_s30 = smov 127   ;;  %s112_s5 = smov 1  }
  0x14   :  { %31 = vrot.lane.b32.xlu0 %v30_v0, %s111_s30  ;;  %v35_v2 = vld [vmem:[#allocation2] sm:$0x1]  ;;  %s113_s9 = smov [#allocation5]  }
  0x15   :  { %v37_v3 = vld [vmem:[%s173_s1] sm:$0x1]  ;;  %s49_s10 = sshll.u32 %s113_s9, 4  ;;  %s50_s10 = int_to_ptr.vmem [resolvable:$true] %s49_s10 }
  0x16   :  { %v40_v7 = vld [vmem:[%s174_s2] sm:$0x1]  ;;  %s84_s3 = scalar_lea.vmem %s50_s10, 16  ;;  %s88_s11 = scalar_lea.vmem %s50_s10, 32 }
  0x17   :  { %p85_p8 = scmp.ne.s32.totalorder %s50_s10, %s84_s3  ;;  %p89_p9 = scmp.lt.s32.totalorder %s50_s10, %s50_s10 }
  0x18   :  { %33 = vrot.lane.b32.xlu0 %v30_v0, %s112_s5  ;;  %p90_p10 = scmp.lt.s32.totalorder %s88_s11, %s84_s3 }
  0x1a   :  { %p91_p11 = por %p90_p10, %p89_p9 }
  0x1c   :  { %p92_p12 = pnand %p91_p11, %p85_p8 }
  0x86   :  { %v32_v1 = vpop.permute.xlu0 %31 }
  0x87   :  { %v36_v5 = vmul.f32 %v35_v2, %v32_v1 }
  0x8a   :  { %v34_v4 = vpop.permute.xlu0 %33 }
  0x8b   :  { %v38_v6 = vmul.f32 %v37_v3, %v34_v4 }
  0x8d   :  { %v39_v8 = vadd.f32 %v38_v6, %v36_v5 }
  0x8f   :  { %v41_v9 = vadd.f32 %v40_v7, %v39_v8 }
  0x91   :  { %42 = vst [vmem:[#allocation5] sm:$0x1] %v41_v9 }
  0x92   :  { %95 = shalt.err (!%p92_p12)
}
  0x93   :  { %s96_s13 = scalar_lea.hbm %s176_s4, 16 }
  0x94   :  { %p97_p13 = scmp.ne.s32.totalorder %s176_s4, %s96_s13  ;;  %p100_p0 = scmp.lt.u32.totalorder %s96_s13, %s176_s4 }
  0x96   :  { %p102_p1 = pnand %p100_p0, %p97_p13 }
  0x98   :  { %105 = shalt.err (!%p102_p1)
}
  0x99   :  { %52 = dma.vmem_to_hbm [thread:$0]  %s50_s10, 16, %s176_s4, [#allocation4]  }
  0x9a   :  { %108 = dma.done.wait [#allocation4], 16  }
  0x9b   :  { %109 = vsyncadd [#allocation4], 4294967280 }
  0x9c   :  { %56 = vsyncpa [#allocation3], 1 }
  0x9d   :  { %57 = vsyncpa [#allocation4], 1 }

</bundles_post_ra>
